<compile_context>
chip_gen: v6e
topology: v6e:2x2x1
jax: 0.10.0
libtpu: 0.0.40
codegen_flags: <defaults>
</compile_context>

<pallas_src>
import functools

import jax
import jax.numpy as jnp
from jax.experimental import pallas as pl
from jax.experimental.pallas import tpu as pltpu

LANE = 128
MAX_BLOCK_ROWS = 8192        # 8192x128: 4 MiB f32 + 1 MiB int8 per step (~10 MiB double-buffered)
SUBLANE_MULT = 32            # int8 sublane tile is (32, 128)
PAD_LOGIT = -1.0e4           # padded logits contribute exactly 0 to every accumulated sum


def _round_up(x, m):
    return ((x + m - 1) // m) * m


def _cdiv(a, b):
    return -(-a // b)


def _pick_block_rows(max_elems):
    """Rows per block: multiple of 32 (valid sublane tiling for f32 and int8), capped."""
    rows = _round_up(max(1, _cdiv(max_elems, LANE)), SUBLANE_MULT)
    return min(MAX_BLOCK_ROWS, rows)


def _num_tensorcores():
    """2 TensorCores per chip on v7x, 1 on v5e/v6e.  A wrong guess only costs perf."""
    try:
        kind = jax.devices()[0].device_kind.lower()
    except Exception:
        return 1
    return 2 if ("v7" in kind or "7x" in kind) else 1


# -----------------------------------------------------------------------------
# Kernel
# -----------------------------------------------------------------------------
def _ae_loss_kernel(lvl_ref, x_ref, z_ref, out_ref, *, bpc, num_levels, half_rows):
    """Fused multi-level BCE-with-logits + binary-IoU + deltaE partial sums.

    out_ref block: (1, num_levels + 1, 4, 128), VMEM-resident per core across the
    "arbitrary" grid axis:
      rows [0..num_levels): [bce_sum, intersection, sum(target), sum(pred > 0)]
      row  num_levels     : [sum((e - f)^2), 0, 0, 0]   (energy pseudo-level)
    """
    c = pl.program_id(0)
    i = pl.program_id(1)
    g = c * bpc + i                                   # global block id

    @pl.when(i == 0)
    def _init():
        out_ref[...] = jnp.zeros_like(out_ref)

    lvl = lvl_ref[g]                                  # level this block belongs to
    x = x_ref[...]                                    # (BR, 128) f32

    @pl.when(lvl < num_levels)
    def _bce_iou():
        # Padded elements carry x = -1e4, z = 0 and contribute exactly 0 to every
        # sum below, so no validity mask is needed.
        z = z_ref[...].astype(jnp.float32)            # int8 {0,1} targets -> f32
        # PyTorch BCEWithLogitsLoss (stable form): max(x,0) - x*z + log1p(exp(-|x|)).
        bce = jnp.maximum(x, 0.0) - x * z + jnp.log1p(jnp.exp(-jnp.abs(x)))
        pred = (x > 0.0).astype(jnp.float32)
        vals = jnp.concatenate(
            [jnp.sum(bce, axis=0, keepdims=True),     # BCE sum
             jnp.sum(z * pred, axis=0, keepdims=True),# intersection
             jnp.sum(z, axis=0, keepdims=True),       # |target|
             jnp.sum(pred, axis=0, keepdims=True)],   # |prediction|
            axis=0)                                   # (4, 128)
        # Level-indexed accumulate (replaces the old one-hot selector broadcast).
        out_ref[0, lvl, :, :] += vals

    @pl.when(lvl == num_levels)
    def _delta_e():
        # Energy pseudo-level: top half rows hold energy_in, bottom half rows hold
        # the reconstruction; zero-padded tails cancel exactly.
        d = x[:half_rows, :] - x[half_rows:, :]
        out_ref[0, num_levels, 0:1, :] += jnp.sum(d * d, axis=0, keepdims=True)


# -----------------------------------------------------------------------------
# Wrapper
# -----------------------------------------------------------------------------
def fused_ae_loss_sums(logits_list, targets_list, energy_in, energy_rec):
    """One pallas_call covering all decoder levels + the energy-reconstruction term.

    Returns per-level f32 vectors (bce_sum, intersection, n_target, n_pred), each of
    shape (L,), plus sum((energy_in - energy_rec)^2) as an f32 scalar.
    """
    num_levels = len(logits_list)
    ns = [int(v.shape[0]) for v in logits_list]
    n_e = int(energy_in.shape[0])
    num_cores = _num_tensorcores()

    block_rows = _pick_block_rows(max(ns + [2 * n_e]))
    blk_elems = block_rows * LANE
    half_rows = block_rows // 2
    half_elems = half_rows * LANE

    x_segs, z_segs, lvl_ids = [], [], []
    for l, (xl, zl, n) in enumerate(zip(logits_list, targets_list, ns)):
        nb = max(1, _cdiv(n, blk_elems))
        pad = nb * blk_elems - n                      # pad only the ragged tail
        x_segs.append(jnp.pad(xl.astype(jnp.float32).reshape(-1), (0, pad),
                              constant_values=PAD_LOGIT))
        z_segs.append(jnp.pad(zl.astype(jnp.int8).reshape(-1), (0, pad)))
        lvl_ids += [l] * nb

    # deltaE pseudo-level: each block = [energy_in chunk ; energy_rec chunk].
    nb_e = max(1, _cdiv(n_e, half_elems))
    pad_e = nb_e * half_elems - n_e
    e = jnp.pad(energy_in.astype(jnp.float32).reshape(-1), (0, pad_e)
                ).reshape(nb_e, half_rows, LANE)
    f = jnp.pad(energy_rec.astype(jnp.float32).reshape(-1), (0, pad_e)
                ).reshape(nb_e, half_rows, LANE)
    x_segs.append(jnp.concatenate([e, f], axis=1).reshape(-1))
    z_segs.append(jnp.zeros((nb_e * blk_elems,), jnp.int8))
    lvl_ids += [num_levels] * nb_e

    # Pad the global block count to a multiple of num_cores (only relevant on v7x).
    g_total = _round_up(len(lvl_ids), num_cores)
    extra = g_total - len(lvl_ids)
    if extra:
        x_segs.append(jnp.full((extra * blk_elems,), PAD_LOGIT, jnp.float32))
        z_segs.append(jnp.zeros((extra * blk_elems,), jnp.int8))
        lvl_ids += [0] * extra                        # contributes exactly 0 to level 0

    # TODO(synk): this pad/cast/concat still writes one padded copy of the inputs to
    # HBM; streaming each ragged level directly (pl.ANY + manual DMA) would remove it.
    x = jnp.concatenate(x_segs).reshape(-1, LANE)     # (g_total*BR, 128) f32
    z = jnp.concatenate(z_segs).reshape(-1, LANE)     # (g_total*BR, 128) int8
    lvl_arr = jnp.asarray(lvl_ids, jnp.int32)

    bpc = g_total // num_cores
    kernel = functools.partial(_ae_loss_kernel, bpc=bpc, num_levels=num_levels,
                               half_rows=half_rows)
    dim_sem = ((pltpu.CORE_PARALLEL, pltpu.ARBITRARY) if num_cores > 1
               else (pltpu.ARBITRARY, pltpu.ARBITRARY))

    out = pl.pallas_call(
        kernel,
        out_shape=jax.ShapeDtypeStruct((num_cores, num_levels + 1, 4, LANE),
                                       jnp.float32),
        grid_spec=pltpu.PrefetchScalarGridSpec(
            num_scalar_prefetch=1,
            grid=(num_cores, bpc),
            in_specs=[
                pl.BlockSpec((block_rows, LANE), lambda c, i, lvl: (c * bpc + i, 0)),
                pl.BlockSpec((block_rows, LANE), lambda c, i, lvl: (c * bpc + i, 0)),
            ],
            out_specs=pl.BlockSpec((1, num_levels + 1, 4, LANE),
                                   lambda c, i, lvl: (c, 0, 0, 0)),
        ),
        compiler_params=pltpu.CompilerParams(
            dimension_semantics=dim_sem,
            vmem_limit_bytes=48 * 1024 * 1024),
    )(lvl_arr, x, z)

    sums = out.sum(axis=(0, 3))                       # (L+1, 4) — reduce cores & lanes
    bce_sum = sums[:num_levels, 0]
    inter = sums[:num_levels, 1]
    n_tgt = sums[:num_levels, 2]
    n_prd = sums[:num_levels, 3]
    sq_sum = sums[num_levels, 0]
    return bce_sum, inter, n_tgt, n_prd, sq_sum


def ae_loss_forward(outputs, inputs, *, training=True, level=3,
                    energy_reco_weight=0.1):
    """JAX/Pallas equivalent of AELoss.forward.  Returns JAX scalars (jit-safe)."""
    energy = inputs[0][:, -1]
    targets = outputs['targets'][0]
    voxel_predictions = outputs['voxel_predictions'][0]
    final_feats = outputs['out'][0]

    if not training:
        return {'accuracy': 0.0, 'loss': 0.0, 'deltaE': 0.0}

    logits = [p.reshape(-1) for p in voxel_predictions[:level]]
    tgts = [t.reshape(-1) for t in targets[:level]]
    ns = jnp.asarray([int(t.shape[0]) for t in tgts], jnp.float32)

    bce_sum, inter, n_tgt, n_prd, sq_sum = fused_ae_loss_sums(
        logits, tgts, energy, final_feats.reshape(-1))

    bce_mean = bce_sum / ns                                    # per-level mean BCE
    union = n_tgt + n_prd - inter                              # inclusion-exclusion
    iou = jnp.where(union > 0, inter / jnp.maximum(union, 1.0), 1.0)

    loss = jnp.mean(bce_mean)
    accuracy = jnp.mean(iou)

    # TODO(synk): MinkowskiEngine sparse-Union over differing coordinate sets has no
    # Pallas equivalent; deltaE assumes identical, aligned coordinates.
    deltaE = sq_sum / energy.shape[0]
    loss = loss + energy_reco_weight * deltaE

    return {'accuracy': accuracy, 'loss': loss, 'deltaE': deltaE}


# -----------------------------------------------------------------------------
# Pure-JAX reference (numerical sanity check for the demo)
# -----------------------------------------------------------------------------
def _reference(outputs, inputs, level, w):
    energy = inputs[0][:, -1]
    targets = outputs['targets'][0][:level]
    preds = outputs['voxel_predictions'][0][:level]
    final = outputs['out'][0].reshape(-1)
    losses, accs = [], []
    for t, p in zip(targets, preds):
        x = p.reshape(-1).astype(jnp.float32)
        z = t.reshape(-1).astype(jnp.float32)
        losses.append(jnp.mean(jnp.maximum(x, 0.0) - x * z
                               + jnp.log1p(jnp.exp(-jnp.abs(x)))))
        pr = (x > 0).astype(jnp.float32)
        inter = jnp.sum(z * pr)
        uni = jnp.sum(jnp.maximum(z, pr))
        accs.append(jnp.where(uni > 0, inter / jnp.maximum(uni, 1.0), 1.0))
    loss = sum(losses) / len(losses)
    acc = sum(accs) / len(accs)
    dE = jnp.mean((energy - final) ** 2)
    return loss + w * dE, acc, dE


# -----------------------------------------------------------------------------
# Demo
# -----------------------------------------------------------------------------
if __name__ == "__main__":
    key = jax.random.PRNGKey(0)
    layer_sizes = [256, 128, 64, 32]   # decoder levels produced by the network
    level = 3                          # only the first `level` contribute to the loss

    keys = jax.random.split(key, 2 * len(layer_sizes) + 3)

    targets, voxel_predictions = [], []
    for li, n in enumerate(layer_sizes):
        t = (jax.random.uniform(keys[2 * li], (n,)) > 0.5).astype(jnp.float32)
        p = jax.random.normal(keys[2 * li + 1], (n, 1), dtype=jnp.float32)
        targets.append(t)
        voxel_predictions.append(p)

    n0 = layer_sizes[0]
    coords = jax.random.randint(keys[-3], (n0, 4), 0, 16).astype(jnp.float32)
    energy = jax.random.uniform(keys[-2], (n0, 1), dtype=jnp.float32) * 5.0
    inputs0 = jnp.concatenate([coords, energy], axis=1)              # (N0, 5)
    final_feats = energy + 0.1 * jax.random.normal(keys[-1], (n0, 1),
                                                   dtype=jnp.float32)
    latent = jnp.zeros((1, 32), jnp.float32)                         # unused by the loss

    outputs = {
        'targets': [targets],
        'voxel_predictions': [voxel_predictions],
        'latent': [latent],
        'out': [final_feats],
    }
    inputs = [inputs0]

    res = ae_loss_forward(outputs, inputs, training=True, level=level,
                          energy_reco_weight=0.1)
    jax.block_until_ready(res['loss'])

    ref_loss, ref_acc, ref_de = _reference(outputs, inputs, level, 0.1)
    ok = (bool(jnp.allclose(res['loss'], ref_loss, rtol=5e-3, atol=1e-5))
          and bool(jnp.allclose(res['accuracy'], ref_acc, rtol=5e-3, atol=1e-5))
          and bool(jnp.allclose(res['deltaE'], ref_de, rtol=5e-3, atol=1e-5)))
    if not ok:
        raise AssertionError(
            f"Pallas/JAX mismatch: pallas={res}, ref=({ref_loss}, {ref_acc}, {ref_de})")
    print("KERNEL_OK")
</pallas_src>

<mosaic_0001>
module attributes {stable_mosaic.version = 11 : i64} {
  func.func @_ae_loss_kernel(%arg0: i32, %arg1: i32, %arg2: memref<4xi32, #tpu.memory_space<smem>>, %arg3: memref<32x128xf32, #tpu.memory_space<vmem>>, %arg4: memref<32x128xi8, #tpu.memory_space<vmem>>, %arg5: memref<1x4x4x128xf32, #tpu.memory_space<vmem>>) attributes {dimension_semantics = [#tpu.dimension_semantics<arbitrary>, #tpu.dimension_semantics<arbitrary>], iteration_bounds = array<i64: 1, 4>, scalar_prefetch = 1 : i64, scratch_operands = 0 : i64, tpu.core_type = #tpu.core_type<tc>, window_params = [{transform_indices = @transform_0, window_bounds = array<i64: 32, 128>}, {transform_indices = @transform_1, window_bounds = array<i64: 32, 128>}, {transform_indices = @transform_2, window_bounds = array<i64: 1, 4, 4, 128>}]} {
    %c4_i32 = arith.constant 4 : i32
    %0 = arith.muli %arg0, %c4_i32 : i32
    %1 = arith.addi %0, %arg1 : i32
    %c0_i32 = arith.constant 0 : i32
    %2 = arith.cmpi eq, %arg1, %c0_i32 : i32
    %3 = arith.extui %2 : i1 to i32
    %c0_i32_0 = arith.constant 0 : i32
    %4 = arith.cmpi ne, %3, %c0_i32_0 : i32
    scf.if %4 {
      %cst = arith.constant 0.000000e+00 : f32
      %14 = vector.broadcast %cst : f32 to vector<1x4x4x128xf32>
      %c0_5 = arith.constant 0 : index
      %c0_6 = arith.constant 0 : index
      %c0_7 = arith.constant 0 : index
      %c0_8 = arith.constant 0 : index
      %15 = vector.load %arg5[%c0_5, %c0_6, %c0_7, %c0_8] : memref<1x4x4x128xf32, #tpu.memory_space<vmem>>, vector<1x4x4x128xf32>
      tpu.vector_store %arg5[%c0_5, %c0_6, %c0_7, %c0_8], %14 {strides = array<i32>} : memref<1x4x4x128xf32, #tpu.memory_space<vmem>>, vector<1x4x4x128xf32>,
    } else {
    }
    %5 = arith.index_cast %1 : i32 to index
    %6 = memref.load %arg2[%5] : memref<4xi32, #tpu.memory_space<smem>>
    %c0 = arith.constant 0 : index
    %c0_1 = arith.constant 0 : index
    %7 = vector.load %arg3[%c0, %c0_1] : memref<32x128xf32, #tpu.memory_space<vmem>>, vector<32x128xf32>
    %c3_i32 = arith.constant 3 : i32
    %8 = arith.cmpi slt, %6, %c3_i32 : i32
    %9 = arith.extui %8 : i1 to i32
    %c0_i32_2 = arith.constant 0 : i32
    %10 = arith.cmpi ne, %9, %c0_i32_2 : i32
    scf.if %10 {
      %c0_5 = arith.constant 0 : index
      %c0_6 = arith.constant 0 : index
      %14 = vector.load %arg4[%c0_5, %c0_6] : memref<32x128xi8, #tpu.memory_space<vmem>>, vector<32x128xi8>
      %15 = arith.sitofp %14 : vector<32x128xi8> to vector<32x128xf32>
      %cst = arith.constant 0.000000e+00 : f32
      %16 = vector.broadcast %cst : f32 to vector<32x128xf32>
      %17 = arith.maximumf %7, %16 : vector<32x128xf32>
      %18 = arith.mulf %7, %15 : vector<32x128xf32>
      %19 = arith.subf %17, %18 : vector<32x128xf32>
      %20 = math.absf %7 : vector<32x128xf32>
      %cst_7 = arith.constant 0.000000e+00 : f32
      %21 = vector.broadcast %cst_7 : f32 to vector<32x128xf32>
      %22 = arith.subf %21, %20 : vector<32x128xf32>
      %23 = math.exp %22 : vector<32x128xf32>
      %24 = math.log1p %23 : vector<32x128xf32>
      %25 = arith.addf %19, %24 : vector<32x128xf32>
      %cst_8 = arith.constant 0.000000e+00 : f32
      %26 = vector.broadcast %cst_8 : f32 to vector<32x128xf32>
      %27 = arith.cmpf ogt, %7, %26 : vector<32x128xf32>
      %28 = arith.extui %27 : vector<32x128xi1> to vector<32x128xi32>
      %29 = arith.sitofp %28 : vector<32x128xi32> to vector<32x128xf32>
      %cst_9 = arith.constant dense<0.000000e+00> : vector<128xf32>
      %30 = vector.multi_reduction <add>, %25, %cst_9 [0] : vector<32x128xf32> to vector<128xf32>
      %31 = vector.shape_cast %30 : vector<128xf32> to vector<1x128xf32>
      %32 = arith.mulf %15, %29 : vector<32x128xf32>
      %cst_10 = arith.constant dense<0.000000e+00> : vector<128xf32>
      %33 = vector.multi_reduction <add>, %32, %cst_10 [0] : vector<32x128xf32> to vector<128xf32>
      %34 = vector.shape_cast %33 : vector<128xf32> to vector<1x128xf32>
      %cst_11 = arith.constant dense<0.000000e+00> : vector<128xf32>
      %35 = vector.multi_reduction <add>, %15, %cst_11 [0] : vector<32x128xf32> to vector<128xf32>
      %36 = vector.shape_cast %35 : vector<128xf32> to vector<1x128xf32>
      %cst_12 = arith.constant dense<0.000000e+00> : vector<128xf32>
      %37 = vector.multi_reduction <add>, %29, %cst_12 [0] : vector<32x128xf32> to vector<128xf32>
      %38 = vector.shape_cast %37 : vector<128xf32> to vector<1x128xf32>
      %39 = tpu.concatenate %31, %34, %36, %38 in 0 : vector<1x128xf32>, vector<1x128xf32>, vector<1x128xf32>, vector<1x128xf32> -> vector<4x128xf32>
      %c0_13 = arith.constant 0 : index
      %40 = arith.index_cast %6 : i32 to index
      %c0_14 = arith.constant 0 : index
      %c0_15 = arith.constant 0 : index
      %41 = vector.load %arg5[%c0_13, %40, %c0_14, %c0_15] : memref<1x4x4x128xf32, #tpu.memory_space<vmem>>, vector<1x1x4x128xf32>
      %42 = vector.shape_cast %41 : vector<1x1x4x128xf32> to vector<4x128xf32>
      %43 = arith.addf %42, %39 : vector<4x128xf32>
      %c0_16 = arith.constant 0 : index
      %44 = arith.index_cast %6 : i32 to index
      %c0_17 = arith.constant 0 : index
      %c0_18 = arith.constant 0 : index
      %45 = vector.load %arg5[%c0_16, %44, %c0_17, %c0_18] : memref<1x4x4x128xf32, #tpu.memory_space<vmem>>, vector<1x1x4x128xf32>
      %46 = vector.shape_cast %45 : vector<1x1x4x128xf32> to vector<4x128xf32>
      %47 = vector.shape_cast %43 : vector<4x128xf32> to vector<1x1x4x128xf32>
      tpu.vector_store %arg5[%c0_16, %44, %c0_17, %c0_18], %47 {strides = array<i32>} : memref<1x4x4x128xf32, #tpu.memory_space<vmem>>, vector<1x1x4x128xf32>,
    } else {
    }
    %c3_i32_3 = arith.constant 3 : i32
    %11 = arith.cmpi eq, %6, %c3_i32_3 : i32
    %12 = arith.extui %11 : i1 to i32
    %c0_i32_4 = arith.constant 0 : i32
    %13 = arith.cmpi ne, %12, %c0_i32_4 : i32
    scf.if %13 {
      %14 = vector.extract_strided_slice %7 {offsets = [0, 0], sizes = [16, 128], strides = [1, 1]} : vector<32x128xf32> to vector<16x128xf32>
      %15 = vector.extract_strided_slice %7 {offsets = [16, 0], sizes = [16, 128], strides = [1, 1]} : vector<32x128xf32> to vector<16x128xf32>
      %16 = arith.subf %14, %15 : vector<16x128xf32>
      %c0_5 = arith.constant 0 : index
      %c3 = arith.constant 3 : index
      %c0_6 = arith.constant 0 : index
      %c0_7 = arith.constant 0 : index
      %17 = vector.load %arg5[%c0_5, %c3, %c0_6, %c0_7] : memref<1x4x4x128xf32, #tpu.memory_space<vmem>>, vector<1x1x1x128xf32>
      %18 = vector.shape_cast %17 : vector<1x1x1x128xf32> to vector<1x128xf32>
      %19 = arith.mulf %16, %16 : vector<16x128xf32>
      %cst = arith.constant dense<0.000000e+00> : vector<128xf32>
      %20 = vector.multi_reduction <add>, %19, %cst [0] : vector<16x128xf32> to vector<128xf32>
      %21 = vector.shape_cast %20 : vector<128xf32> to vector<1x128xf32>
      %22 = arith.addf %18, %21 : vector<1x128xf32>
      %c0_8 = arith.constant 0 : index
      %c3_9 = arith.constant 3 : index
      %c0_10 = arith.constant 0 : index
      %c0_11 = arith.constant 0 : index
      %23 = vector.load %arg5[%c0_8, %c3_9, %c0_10, %c0_11] : memref<1x4x4x128xf32, #tpu.memory_space<vmem>>, vector<1x1x1x128xf32>
      %24 = vector.shape_cast %23 : vector<1x1x1x128xf32> to vector<1x128xf32>
      %25 = vector.shape_cast %22 : vector<1x128xf32> to vector<1x1x1x128xf32>
      tpu.vector_store %arg5[%c0_8, %c3_9, %c0_10, %c0_11], %25 {strides = array<i32>} : memref<1x4x4x128xf32, #tpu.memory_space<vmem>>, vector<1x1x1x128xf32>,
    } else {
    }
    return
  }
  func.func @transform_0(%arg0: i32, %arg1: i32, %arg2: memref<4xi32, #tpu.memory_space<smem>>) -> (i32, i32) {
    %c4_i32 = arith.constant 4 : i32
    %0 = arith.muli %arg0, %c4_i32 : i32
    %1 = arith.addi %0, %arg1 : i32
    %c0_i32 = arith.constant 0 : i32
    %c0_i32_0 = arith.constant 0 : i32
    return %1, %c0_i32 : i32, i32
  }
  func.func @transform_1(%arg0: i32, %arg1: i32, %arg2: memref<4xi32, #tpu.memory_space<smem>>) -> (i32, i32) {
    %c4_i32 = arith.constant 4 : i32
    %0 = arith.muli %arg0, %c4_i32 : i32
    %1 = arith.addi %0, %arg1 : i32
    %c0_i32 = arith.constant 0 : i32
    %c0_i32_0 = arith.constant 0 : i32
    return %1, %c0_i32 : i32, i32
  }
  func.func @transform_2(%arg0: i32, %arg1: i32, %arg2: memref<4xi32, #tpu.memory_space<smem>>) -> (i32, i32, i32, i32) {
    %c0_i32 = arith.constant 0 : i32
    %c0_i32_0 = arith.constant 0 : i32
    %c0_i32_1 = arith.constant 0 : i32
    %c0_i32_2 = arith.constant 0 : i32
    return %arg0, %c0_i32, %c0_i32_0, %c0_i32_1 : i32, i32, i32, i32
  }
}

</mosaic_0001>

<bundles_post_ra>
// kernel: tpu_custom_call.1
= control target key start
LH: loop header
LB: loop body
LE: loop exit
PB: predicated region body
PF: predicated region fallthrough
CT: control target
= control target key end

     0   :  { %s770_s12 = smov [#allocation3]   ;;  %s997_s0 = inlined_call_operand.hbm [shape: s32[4], index: 0, kind: input, shape index: {}]   ;;  %s998_s1 = inlined_call_operand.hbm [shape: f32[128,128], index: 1, kind: input, shape index: {}]   ;;  %s999_s2 = inlined_call_operand.hbm [shape: s8[128,128], index: 2, kind: input, shape index: {}]   ;;  %s1000_s3 = inlined_call_operand.hbm [shape: f32[1,4,4,128], index: 3, kind: output, shape index: {}]  }
   0x1   :  { %9 = dma.hbm_to_smem %s997_s0, 16, %s770_s12, [#allocation2] }
   0x2   :  { %732 = dma.done.wait [#allocation2], 16 }
   0x3   :  { %733 = vsyncadd [#allocation2], 4294967280 }
   0x4   :  { %11 = sfence }
   0x5   :  { %12 = vsyncpa [#allocation5], 0 }
   0x6   :  { %14 = vsyncpa [#allocation5 + $0x1], 0 }
   0x7   :  { %15 = vsyncpa [#allocation8], 0 }
   0x8   :  { %17 = vsyncpa [#allocation8 + $0x1], 0 }
   0x9   :  { %18 = vsyncpa [#allocation6], 0  ;;  %s803_s15 = smov 0   ;;  %s805_s16 = smov 0  }
   0xa   :  { %s807_s17 = smov 0   ;;  %s809_s18 = smov 0  }
   0xb   :  { %s811_s19 = smov 0   ;;  %s813_s20 = smov 0  }
   0xc LB: > { %s506_s0 = sadd.s32 4294967295, %s768_s20   ;;  %s33_s21 = sadd.s32 1, %s764_s19  ;;  %s768_s20 = sphi %s813_s20, %s24_s20   ;;  %s764_s19 = sphi %s811_s19, %s1014_s19   ;;  %s760_s18 = sphi %s809_s18, %s1013_s18   ;;  %s756_s17 = sphi %s807_s17, %s1012_s17   ;;  %s752_s16 = sphi %s805_s16, %s1011_s16   ;;  %s748_s15 = sphi %s803_s15, %s1010_s15  }
   0xd   : > { %p34_p0 = scmp.ge.s32.totalorder %s33_s21, 4  ;;  %s47_s22 = sadd.s32 1, %s756_s17 }
   0xe   : > { %p54_p1 = scmp.ne.s32.totalorder %s756_s17, %s752_s16  ;;  %p55_p2 = scmp.eq.s32.totalorder %s768_s20, 0 }
   0xf   : > { %s1016_s21 = smov (%p34_p0, %s33_s21), 0  ;;  %p60_p4 = scmp.ne.s32.totalorder %s752_s16, %s748_s15 }
  0x10   : > { %p839_p3 = por %p55_p2, %p54_p1  ;;  %s44_s24 = ssub.s32 %s764_s19, %s1016_s21 }
  0x11   : > { %p61_p5 = scmp.eq.s32.totalorder %s506_s0, 0  ;;  %p45_p6 = scmp.eq.s32.totalorder %s44_s24, 0 }
  0x12   : > { %p545_p8 = scmp.lt.s32.totalorder %s768_s20, 4  ;;  %s857_s27 = sand.u32 1, %s756_s17  }
  0x13   : > { %p848_p7 = por %p61_p5, %p60_p4  ;;  %s529_s28 = sshll.u32 %s764_s19, 9 }
  0x14   : > { %s854_s26 = scalar_select %p45_p6, %s756_s17, %s47_s22  }
  0x15   : > { %s509_s29 = sshll.u32 %s857_s27, 5  ;;  %s152_s5 = scalar_lea.hbm %s998_s1, %s529_s28 }
  0x16   : > { %s144_s6 = scalar_lea.vmem [#allocation4], %s509_s29  ;;  %p866_p9 = pnand %p545_p8, %p839_p3 }
  0x17   : > { %s153_s7 = sshll.u32 %s144_s6, 4  ;;  %s141_s9 = scalar_lea.sflag [#allocation5], %s857_s27  ;;  %s154_s7 = int_to_ptr.vmem [resolvable:$true] %s153_s7 }
  0x18   : > { %p630_p10 = pneg %p866_p9  ;;  %s641_s10 = scalar_lea.vmem %s154_s7, 512 }
  0x19   : > { %p642_p11 = scmp.ne.s32.totalorder %s154_s7, %s641_s10  ;;  %s771_s11 = smov [#allocation4]  }
  0x1a   : > { %s646_s12 = sshll.u32 %s771_s11, 4  ;;  %s647_s12 = int_to_ptr.vmem [resolvable:$false] %s646_s12 }
  0x1b   : > { %p644_p12 = pnand %p642_p11, %p630_p10  ;;  %s648_s13 = scalar_lea.vmem %s647_s12, 1024 }
  0x1c   : > { %p649_p0 = scmp.lt.s32.totalorder %s154_s7, %s647_s12  ;;  %p650_p1 = scmp.lt.s32.totalorder %s648_s13, %s641_s10 }
  0x1d   : > { %p645_p13 = pneg %p644_p12 }
  0x1e   : > { %p651_p2 = por %p650_p1, %p649_p0 }
  0x20   : > { %p652_p3 = pnand %p651_p2, %p645_p13 }
  0x22   : > { %655 = shalt.err (!%p652_p3)
}
  0x23   : > { %s772_s14 = smov 128   ;;  %s773_s15 = smov 8  }
  0x24   : > { %541 = dma.hbm_to_vmem [thread:$0]  (!%p866_p9), %s152_s5, 512, %s154_s7, %s141_s9, %s772_s14, %s772_s14, %s773_s15  }
  0x25   : > { %p514_p4 = scmp.ge.s32.totalorder %s768_s20, 1  ;;  %p181_p5 = scmp.lt.s32.totalorder %s768_s20, 5 }
  0x26   : > { %s512_s22 = sshll.u32 %s857_s27, 3  ;;  %s513_s24 = sshll.u32 %s764_s19, 7 }
  0x27   : > { %p881_p6 = pnand %p514_p4, %p181_p5  ;;  %s167_s28 = scalar_lea.vmem [#allocation7], %s512_s22 }
  0x28   : > { %s176_s29 = sshll.u32 %s167_s28, 4  ;;  %s174_s6 = scalar_lea.hbm %s999_s2, %s513_s24  ;;  %s177_s29 = int_to_ptr.vmem [resolvable:$true] %s176_s29 }
  0x29   : > { %s164_s10 = scalar_lea.sflag [#allocation8], %s857_s27  ;;  %s669_s11 = scalar_lea.vmem %s177_s29, 128 }
  0x2a   : > { %p670_p8 = scmp.ne.s32.totalorder %s177_s29, %s669_s11  ;;  %s774_s5 = smov [#allocation7]  }
  0x2b   : > { %s674_s7 = sshll.u32 %s774_s5, 4  ;;  %s675_s7 = int_to_ptr.vmem [resolvable:$false] %s674_s7 }
  0x2c   : > { %p672_p11 = pnand %p670_p8, %p630_p10  ;;  %s676_s9 = scalar_lea.vmem %s675_s7, 256 }
  0x2d   : > { %p677_p13 = scmp.lt.s32.totalorder %s177_s29, %s675_s7  ;;  %p678_p0 = scmp.lt.s32.totalorder %s676_s9, %s669_s11 }
  0x2e   : > { %p673_p12 = pneg %p672_p11 }
  0x2f   : > { %p679_p1 = por %p678_p0, %p677_p13 }
  0x31   : > { %p680_p2 = pnand %p679_p1, %p673_p12 }
  0x33   : > { %683 = shalt.err (!%p680_p2)
}
  0x34   : > { %544 = dma.hbm_to_vmem [thread:$0]  (!%p866_p9), %s174_s6, 128, %s177_s29, %s164_s10  }
  0x35   : > { %185 = sbr.rel (%p881_p6) target bundleno = 195 (0xc3), region = 28  ;;  %s187_s27 = sand.u32 (!%p881_p6), 1, %s752_s16  }
  0x36   : > { %s515_s12 = sshll.u32 (!%p881_p6), %s187_s27, 5  ;;  %s188_s13 = scalar_lea.sflag (!%p881_p6), [#allocation5], %s187_s27 }
  0x37   : > { %s191_s14 = scalar_lea.vmem (!%p881_p6), [#allocation4], %s515_s12 }
  0x3a   : > { %735 = dma.done.wait (%p848_p7), %s188_s13, 512  }
  0x3b   : > { %737 = vsyncadd (%p848_p7), %s188_s13, 4294966784  ;;  %s516_s15 = sshll.u32 %s187_s27, 3  ;;  %s197_s22 = scalar_lea.sflag [#allocation8], %s187_s27 }
  0x3c   : > { %s902_s24 = scalar_lea.vmem [#allocation7], %s516_s15 }
  0x3d   : > { %739 = dma.done.wait (%p848_p7), %s197_s22, 128  }
  0x3e   : > { %741 = vsyncadd (%p848_p7), %s197_s22, 4294967168  ;;  %p517_p9 = scmp.ne.s32.totalorder %s760_s18, 0 }
  0x40   : > { %231 = sbr.rel (%p517_p9) target bundleno = 72 (0x48), region = 40 }
  0x45   : > { %v775_v0 = vmov 0.0  }
  0x46   : > { %232 = vst [vmem:[#allocation9] sm:$0xf] %v775_v0  ;;  %233 = vst [vmem:[#allocation9 + $0x4] sm:$0xf] %v775_v0 }
  0x47   : > { %234 = vst [vmem:[#allocation9 + $0x8] sm:$0xf] %v775_v0  ;;  %235 = vst [vmem:[#allocation9 + $0xc] sm:$0xf] %v775_v0 }
  0x48 PF: > { %s910_s8 = sld [smem:[#allocation3 + %s760_s18]]  ;;  %v912_v1 = vld [vmem:[%s191_s14] sm:$0xff]  ;;  %v914_v2 = vld [vmem:[%s191_s14 + $0x8] sm:$0xff]  ;;  %v916_v3 = vld [vmem:[%s191_s14 + $0x10] sm:$0xff] }
  0x49   : > { %v918_v4 = vld [vmem:[%s191_s14 + $0x18] sm:$0xff] }
  0x4e   : > { %p518_p7 = scmp.ge.s32.totalorder %s910_s8, 3 }
  0x4f   : > { %s523_s18 = sshll.u32 (!%p518_p7), %s910_s8, 2 }
  0x50   : > { %244 = sbr.rel (%p518_p7) target bundleno = 151 (0x97), region = 44  ;;  %s381_s25 = scalar_lea.vmem (!%p518_p7), [#allocation9], %s523_s18 }
  0x55   : > { %v266_v5 = vand.u32 2147483647, %v912_v1  ;;  %v267_v6 = vand.u32 2147483647, %v914_v2  ;;  %v268_v7 = vand.u32 2147483647, %v916_v3 }
  0x56   : > { %v269_v8 = vand.u32 2147483647, %v918_v4  ;;  %v245_v17 = vld [vmem:[%s902_s24] sm:$0xff]  ;;  %vm322_vm0 = vcmp.gt.f32.partialorder %v912_v1, 0.0  ;;  %vm323_vm1 = vcmp.gt.f32.partialorder %v914_v2, 0.0  ;;  %v776_v20 = vmov 0.0  }
  0x57   : > { %v270_v9 = vsub.f32 0.0, %v266_v5  ;;  %v271_v10 = vsub.f32 0.0, %v267_v6  ;;  %v272_v11 = vsub.f32 0.0, %v268_v7  ;;  %v246_v18 = vunpack.c.0.s8 %v245_v17 }
  0x58   : > { %v273_v12 = vsub.f32 0.0, %v269_v8  ;;  %v247_v19 = vunpack.c.1.s8 %v245_v17  ;;  %v519_v21 = vsel %vm322_vm0, 1.0, %v776_v20  ;;  %v520_v22 = vsel %vm323_vm1, 1.0, %v776_v20 }
  0x59   : > { %v274_v13 = vmul.f32 1.442695, %v270_v9  ;;  %v276_v14 = vmul.f32 1.442695, %v271_v10  ;;  %v278_v15 = vmul.f32 1.442695, %v272_v11  ;;  %v248_v23 = vunpack.c.2.s8 %v245_v17 }
  0x5a   : > { %v280_v16 = vmul.f32 1.442695, %v273_v12  ;;  %v250_v24 = vcvt.s32.f32 %v246_v18  ;;  %v251_v25 = vcvt.s32.f32 %v247_v19  ;;  %vm324_vm2 = vcmp.gt.f32.partialorder %v916_v3, 0.0 }
  0x5b   : > { %604 = vpow2.f32 %v274_v13  ;;  %v249_v32 = vunpack.c.3.s8 %v245_v17  ;;  %v521_v34 = vsel %vm324_vm2, 1.0, %v776_v20  ;;  %v252_v36 = vcvt.s32.f32 %v248_v23 }
  0x5c   : > { %606 = vpow2.f32 %v276_v14  ;;  %v343_v29 = vmul.f32 %v519_v21, %v250_v24  ;;  %v344_v30 = vmul.f32 %v520_v22, %v251_v25  ;;  %vm325_vm3 = vcmp.gt.f32.partialorder %v918_v4, 0.0 }
  0x5d   : > { %608 = vpow2.f32 %v278_v15  ;;  %v345_v39 = vmul.f32 %v521_v34, %v252_v36  ;;  %v522_v41 = vsel %vm325_vm3, 1.0, %v776_v20  ;;  %v356_v42 = vadd.f32 %v251_v25, %v250_v24 }
  0x5e   : > { %610 = vpow2.f32 %v280_v16  ;;  %v347_v40 = vadd.f32 %v344_v30, %v343_v29  ;;  %v253_v43 = vcvt.s32.f32 %v249_v32  ;;  %v365_v45 = vadd.f32 %v520_v22, %v519_v21 }
  0x5f   : > { %v254_v50 = vmax.f32 %v912_v1, 0.0  ;;  %v255_v51 = vmax.f32 %v914_v2, 0.0  ;;  %v357_v52 = vadd.f32 %v356_v42, %v252_v36  ;;  %v258_v53 = vmul.f32 %v250_v24, %v912_v1 }
  0x60   : > { %v346_v48 = vmul.f32 %v522_v41, %v253_v43  ;;  %v348_v49 = vadd.f32 %v347_v40, %v345_v39  ;;  %v366_v56 = vadd.f32 %v521_v34, %v365_v45  ;;  %v256_v57 = vmax.f32 %v916_v3, 0.0 }
  0x61   : > { %v259_v58 = vmul.f32 %v251_v25, %v914_v2  ;;  %v257_v61 = vmax.f32 %v918_v4, 0.0  ;;  %v260_v5 = vmul.f32 %v252_v36, %v916_v3  ;;  %v261_v6 = vmul.f32 %v253_v43, %v918_v4 }
  0x62   : > { %v349_v0 = vadd.f32 %v348_v49, %v346_v48  ;;  %v358_v8 = vadd.f32 %v357_v52, %v253_v43  ;;  %v262_v9 = vsub.f32 %v254_v50, %v258_v53  ;;  %v367_v12 = vadd.f32 %v522_v41, %v366_v56 }
  0x63   : > { %v263_v14 = vsub.f32 %v255_v51, %v259_v58  ;;  %v264_v24 = vsub.f32 %v256_v57, %v260_v5  ;;  %vm374_vm8 = vcmask 1040384   ;;  %vm376_vm9 = vcmask 1041408  }
  0x64   : > { %v350_v22 = vrot.slane %v349_v0, 4  ;;  %v368_v30 = vrot.slane %v367_v12, 4  ;;  %vm378_vm10 = vcmask 1042432  }
  0x66   : > { %v351_v39 = vadd.f32 %v350_v22, %v349_v0 }
  0x68   : > { %v605_v26 = vpop.eup %604 }
  0x69   : > { %v607_v27 = vpop.eup %606  ;;  %v282_v28 = vadd.f32 1.0, %v605_v26  ;;  %v285_v44 = vmul.f32 -0.5, %v605_v26  ;;  %v288_v59 = vand.u32 2147483647, %v605_v26 }
  0x6a   : > { %v609_v31 = vpop.eup %608  ;;  %v291_v33 = vadd.f32 1.0, %v607_v27  ;;  %v294_v46 = vmul.f32 -0.5, %v607_v27  ;;  %v297_v62 = vand.u32 2147483647, %v607_v27 }
  0x6b   : > { %v929_v35 = vpop.eup %610  ;;  %612 = vlog2.f32 %v282_v28  ;;  %v300_v37 = vadd.f32 1.0, %v609_v31  ;;  %v303_v47 = vmul.f32 -0.5, %v609_v31  ;;  %v286_v54 = vadd.f32 1.0, %v285_v44 }
  0x6c   : > { %614 = vlog2.f32 %v291_v33  ;;  %v309_v38 = vadd.f32 1.0, %v929_v35  ;;  %v312_v55 = vmul.f32 -0.5, %v929_v35  ;;  %v295_v60 = vadd.f32 1.0, %v294_v46 }
  0x6d   : > { %616 = vlog2.f32 %v300_v37  ;;  %v304_v63 = vadd.f32 1.0, %v303_v47  ;;  %v306_v7 = vand.u32 2147483647, %v609_v31  ;;  %v287_v10 = vmul.f32 %v605_v26, %v286_v54 }
  0x6e   : > { %618 = vlog2.f32 %v309_v38  ;;  %v313_v11 = vadd.f32 1.0, %v312_v55  ;;  %vm942_vm4 = vcmp.lt.f32.partialorder %v288_v59, 0.0004427343  ;;  %v296_v16 = vmul.f32 %v607_v27, %v295_v60 }
  0x6f   : > { %v315_v17 = vand.u32 2147483647, %v929_v35  ;;  %vm947_vm5 = vcmp.lt.f32.partialorder %v297_v62, 0.0004427343  ;;  %v305_v21 = vmul.f32 %v609_v31, %v304_v63  ;;  %vm307_vm6 = vcmp.lt.f32.partialorder %v306_v7, 0.0004427343 }
  0x70   : > { %v359_v26 = vrot.slane %v358_v8, 4  ;;  %v314_v27 = vmul.f32 %v929_v35, %v313_v11  ;;  %v265_v33 = vsub.f32 %v257_v61, %v261_v6  ;;  %v369_v44 = vadd.f32 %v368_v30, %v367_v12  ;;  %v382_v6 = vld [vmem:[%s381_s25] sm:$0xf] }
  0x71   : > { %vm316_vm7 = vcmp.lt.f32.partialorder %v315_v17, 0.0004427343  ;;  %v352_v46 = vrot.slane %v351_v39, 2 }
  0x72   : > { %v360_v41 = vadd.f32 %v359_v26, %v358_v8  ;;  %v370_v49 = vrot.slane %v369_v44, 2 }
  0x73   : > { %v353_v51 = vadd.f32 %v352_v46, %v351_v39 }
  0x74   : > { %v361_v47 = vrot.slane %v360_v41, 2  ;;  %v371_v54 = vadd.f32 %v370_v49, %v369_v44 }
  0x75   : > { %v354_v56 = vrot.slane %v353_v51, 1 }
  0x76   : > { %v362_v52 = vadd.f32 %v361_v47, %v360_v41  ;;  %v372_v59 = vrot.slane %v371_v54, 1 }
  0x77   : > { %v355_v61 = vadd.f32 %v354_v56, %v353_v51 }
  0x78   : > { %v613_v13 = vpop.eup %612  ;;  %v363_v57 = vrot.slane %v362_v52, 1  ;;  %v373_v0 = vadd.f32 %v372_v59, %v371_v54 }
  0x79   : > { %v615_v18 = vpop.eup %614  ;;  %v284_v19 = vmul.f32 0.6931472, %v613_v13 }
  0x7a   : > { %v617_v23 = vpop.eup %616  ;;  %v293_v25 = vmul.f32 0.6931472, %v615_v18  ;;  %v364_v62 = vadd.f32 %v363_v57, %v362_v52 }
  0x7b   : > { %v290_v28 = vsel %vm942_vm4, %v287_v10, %v284_v19  ;;  %v302_v29 = vmul.f32 0.6931472, %v617_v23  ;;  %v619_v32 = vpop.eup %618 }
  0x7c   : > { %v299_v34 = vsel %vm947_vm5, %v296_v16, %v293_v25  ;;  %v318_v31 = vadd.f32 %v290_v28, %v262_v9  ;;  %v311_v37 = vmul.f32 0.6931472, %v619_v32 }
  0x7d   : > { %v308_v36 = vsel %vm307_vm6, %v305_v21, %v302_v29  ;;  %v319_v38 = vadd.f32 %v299_v34, %v263_v14 }
  0x7e   : > { %v320_v40 = vadd.f32 %v308_v36, %v264_v24  ;;  %v317_v42 = vsel %vm316_vm7, %v314_v27, %v311_v37 }
  0x7f   : > { %v334_v43 = vadd.f32 %v319_v38, %v318_v31  ;;  %v321_v45 = vadd.f32 %v317_v42, %v265_v33 }
  0x81   : > { %v335_v35 = vadd.f32 %v334_v43, %v320_v40 }
  0x83   : > { %v336_v48 = vadd.f32 %v335_v35, %v321_v45 }
  0x85   : > { %v337_v50 = vrot.slane %v336_v48, 4 }
  0x87   : > { %v338_v53 = vadd.f32 %v337_v50, %v336_v48 }
  0x89   : > { %v339_v55 = vrot.slane %v338_v53, 2 }
  0x8b   : > { %v340_v58 = vadd.f32 %v339_v55, %v338_v53 }
  0x8d   : > { %v341_v60 = vrot.slane %v340_v58, 1 }
  0x8f   : > { %v342_v63 = vadd.f32 %v341_v60, %v340_v58 }
  0x91   : > { %v375_v5 = vsel %vm374_vm8, %v342_v63, %v355_v61 }
  0x92   : > { %v377_v7 = vsel %vm376_vm9, %v375_v5, %v364_v62 }
  0x93   : > { %v379_v8 = vsel %vm378_vm10, %v377_v7, %v373_v0 }
  0x94   : > { %v383_v9 = vadd.f32 %v382_v6, %v379_v8 }
  0x96   : > { %384 = vst [vmem:[%s381_s25] sm:$0xf] %v383_v9 }
  0x97 PF: > { %p524_p10 = scmp.ne.s32.totalorder %s910_s8, 3 }
  0x99   : > { %388 = sbr.rel (%p524_p10) target bundleno = 179 (0xb3), region = 48 }
  0x9e   : > { %v389_v10 = vsub.f32 %v912_v1, %v916_v3  ;;  %v390_v11 = vsub.f32 %v914_v2, %v918_v4  ;;  %v392_v20 = vld [vmem:[#allocation9 + $0xc] sm:$0x1] }
  0xa0   : > { %v393_v12 = vmul.f32 %v389_v10, %v389_v10  ;;  %v394_v13 = vmul.f32 %v390_v11, %v390_v11 }
  0xa2   : > { %v395_v14 = vadd.f32 %v394_v13, %v393_v12 }
  0xa4   : > { %v396_v15 = vrot.slane %v395_v14, 4 }
  0xa6   : > { %v397_v16 = vadd.f32 %v396_v15, %v395_v14 }
  0xa8   : > { %v398_v17 = vrot.slane %v397_v16, 2 }
  0xaa   : > { %v399_v18 = vadd.f32 %v398_v17, %v397_v16 }
  0xac   : > { %v400_v19 = vrot.slane %v399_v18, 1 }
  0xae   : > { %v401_v21 = vadd.f32 %v400_v19, %v399_v18 }
  0xb0   : > { %v402_v22 = vadd.f32 %v401_v21, %v392_v20 }
  0xb2   : > { %403 = vst [vmem:[#allocation9 + $0xc] sm:$0x1] %v402_v22 }
  0xb3 PF: > { %p964_p3 = scmp.eq.s32.totalorder %s506_s0, 3  ;;  %s777_s28 = smov [#allocation9]  }
  0xb4   : > { %s413_s29 = sshll.u32 %s777_s28, 4  ;;  %s414_s29 = int_to_ptr.vmem [resolvable:$true] %s413_s29 }
  0xb5   : > { %s684_s30 = scalar_lea.vmem %s414_s29, 256  ;;  %p691_p8 = scmp.lt.s32.totalorder %s414_s29, %s414_s29 }
  0xb6   : > { %p685_p4 = scmp.ne.s32.totalorder %s414_s29, %s684_s30  ;;  %p692_p11 = scmp.lt.s32.totalorder %s684_s30, %s684_s30 }
  0xb8   : > { %p686_p5 = pnand %p685_p4, %p964_p3  ;;  %p693_p12 = por %p692_p11, %p691_p8 }
  0xba   : > { %p687_p6 = pneg %p686_p5 }
  0xbc   : > { %p694_p13 = pnand %p693_p12, %p687_p6 }
  0xbe   : > { %697 = shalt.err (!%p694_p13)
}
  0xbf   : > { %s778_s4 = smov 64   ;;  %s779_s0 = smov 4  }
  0xc0   : > { %535 = dma.vmem_to_hbm [thread:$0]  (%p964_p3), %s414_s29, 256, %s1000_s3, [#allocation6], %s778_s4, %s778_s4, %s779_s0  }
  0xc1   : > { %743 = dma.done.wait (%p964_p3), [#allocation6], 256  }
  0xc2   : > { %745 = vsyncadd (%p964_p3), [#allocation6], 4294967040 }
  0xc3 PF: > { %s24_s20 = sadd.s32 1, %s768_s20   ;;  %s1010_s15 = smov %s752_s16 }
  0xc4   : > { %p21_p0 = scmp.ge.s32.totalorder %s24_s20, 6   ;;  %s1011_s16 = smov %s756_s17 }
  0xc5   : > { %s1012_s17 = smov %s854_s26  ;;  %s1013_s18 = smov %s764_s19 }
  0xc6   : > { %s1014_s19 = smov %s1016_s21  ;;  %23 = sbr.rel (!%p21_p0) target bundleno = 12 (0xc), region = 93 }
  0xcb   :  { %429 = vsyncpa [#allocation5], 1 }
  0xcc   :  { %431 = vsyncpa [#allocation5 + $0x1], 1 }
  0xcd   :  { %432 = vsyncpa [#allocation8], 1 }
  0xce   :  { %434 = vsyncpa [#allocation8 + $0x1], 1 }
  0xcf   :  { %435 = vsyncpa [#allocation6], 1 }
  0xd0   :  { %437 = vsyncpa [#allocation6 + $0x1], 1 }

</bundles_post_ra>
